<compile_context>
chip_gen: v7x
topology: tpu7x:2x2x1
jax: 0.10.0
libtpu: 0.0.40
codegen_flags: <defaults>
</compile_context>

<pallas_src>
import jax
import jax.numpy as jnp
from jax.experimental import pallas as pl
from jax.experimental.pallas import tpu as pltpu

VOCAB_SIZE_W2V = 1000
WORD_SIZE = 128
LANE = 128
SUBLANE = 8
TILE_N_MAX = 512           # rows per grid step
NEG_INF = -1e30


def _round_up(x, m):
    return (x + m - 1) // m * m


def _choose_tile_n(n):
    """Pick a row-tile size (multiple of 8, <= TILE_N_MAX).

    Small problems use a single tile; anything larger is split into >= 2 tiles
    so the "parallel" grid axis can be sharded across v7x's two TensorCores.
    """
    n8 = _round_up(max(n, 1), SUBLANE)
    if n8 <= 256:
        return n8
    return min(TILE_N_MAX, _round_up(pl.cdiv(n8, 2), SUBLANE))


def cbow_kernel(ctx_ref, wt_ref, b_ref, pred_ref):
    # ctx_ref  : (TILE_N, D)   bf16  pre-fused context (tanh(prev)+tanh(next))
    # wt_ref   : (D, V_pad)    bf16  pre-transposed Linear weight (resident)
    # b_ref    : (1, V_pad)    f32   bias, -1e30 on padded vocab columns
    # pred_ref : (TILE_N, V_pad) f32 log_softmax output (lane-dense store)

    # MXU: canonical (T,128)x(128,1024) matmul, bf16 in / f32 accumulate.
    logits = jnp.dot(ctx_ref[...], wt_ref[...],
                     preferred_element_type=jnp.float32) + b_ref[...]

    # log_softmax; padded vocab columns carry -1e30 bias -> exp underflows to 0.
    m = jnp.max(logits, axis=1, keepdims=True)
    shifted = logits - m
    lse = jnp.log(jnp.sum(jnp.exp(shifted), axis=1, keepdims=True))
    pred_ref[...] = shifted - lse


def pack_cbow_linear(w, b):
    """One-time packing of the nn.Linear(128, 1000) parameters.

    Hoisted out of the per-call forward: bf16 cast, vocab pad 1000 -> 1024,
    transpose to (D, V_pad), and -1e30 bias padding all happen exactly once.
    """
    V, D = w.shape
    v_pad = _round_up(V, LANE)
    wt = jnp.asarray(
        jnp.pad(w.astype(jnp.bfloat16), ((0, v_pad - V), (0, 0))).T)   # (D, v_pad)
    b_pad = jnp.concatenate(
        [b.astype(jnp.float32),
         jnp.full((v_pad - V,), NEG_INF, jnp.float32)]).reshape(1, v_pad)
    return wt, b_pad


@jax.jit
def cbow_forward(sentences, embed_table, wt_packed, b_packed):
    S = sentences.shape[0]
    N = S - 2
    D = embed_table.shape[1]
    V = VOCAB_SIZE_W2V
    v_pad = wt_packed.shape[1]

    tile_n = _choose_tile_n(N)
    n_pad = _round_up(_round_up(N, SUBLANE), tile_n)
    num_tiles = n_pad // tile_n

    # Embedding gather + tanh + shifted add stay in XLA (data-dependent row
    # gather; it fuses into a single pass).  Cast to bf16 here — the kernel
    # only uses ctx as an MXU operand, so this is numerically identical and
    # halves the streamed bytes.
    # TODO(synk): fuse the gather into the kernel via scalar-prefetched token
    # ids + manual DMA from an ANY-space embed_table.
    emb = jnp.tanh(embed_table[sentences])                       # (S, D) f32
    ctx = (emb[:-2] + emb[2:]).astype(jnp.bfloat16)              # (N, D) bf16
    ctx = jnp.pad(ctx, ((0, n_pad - N), (0, 0)))                 # (n_pad, D)

    targets = sentences[1:-1].astype(jnp.int32)                  # (N,)

    cost = pl.CostEstimate(
        flops=2 * n_pad * D * v_pad,
        transcendentals=n_pad * v_pad + n_pad,                   # exp + log
        bytes_accessed=(n_pad * D * 2                            # ctx (bf16)
                        + D * v_pad * 2                          # W  (bf16)
                        + v_pad * 4                              # b
                        + n_pad * v_pad * 4),                    # pred out
    )

    pred_pad = pl.pallas_call(
        cbow_kernel,
        out_shape=jax.ShapeDtypeStruct((n_pad, v_pad), jnp.float32),
        grid=(num_tiles,),
        in_specs=[
            pl.BlockSpec((tile_n, D), lambda i: (i, 0)),     # ctx  (streams)
            pl.BlockSpec((D, v_pad), lambda i: (0, 0)),      # W    (resident)
            pl.BlockSpec((1, v_pad), lambda i: (0, 0)),      # b    (resident)
        ],
        out_specs=pl.BlockSpec((tile_n, v_pad), lambda i: (i, 0)),  # lane-dense
        compiler_params=pltpu.CompilerParams(
            dimension_semantics=("parallel",),
            vmem_limit_bytes=32 * 1024 * 1024,
        ),
        cost_estimate=cost,
    )(ctx, wt_packed, b_packed)

    pred = pred_pad[:N, :V]                                      # (N, 1000) f32

    # F.cross_entropy's internal log_softmax on pred is the identity, so the
    # loss is just the mean NLL of pred — a trivial XLA gather + mean.
    nll = -pred[jnp.arange(N), targets]
    loss = jnp.mean(nll)
    return loss, sentences[1:-1], pred


if __name__ == "__main__":
    key = jax.random.PRNGKey(0)
    k_emb, k_w, k_b, k_sent = jax.random.split(key, 4)

    # Deterministic parameter init matching PyTorch shapes:
    #   nn.Embedding(1000, 128): weight ~ N(0, 1)
    #   nn.Linear(128, 1000):    weight, bias ~ U(-1/sqrt(128), 1/sqrt(128))
    embed_table = jax.random.normal(k_emb, (VOCAB_SIZE_W2V, WORD_SIZE),
                                    dtype=jnp.float32)
    bound = 1.0 / (WORD_SIZE ** 0.5)
    w = jax.random.uniform(k_w, (VOCAB_SIZE_W2V, WORD_SIZE),
                           minval=-bound, maxval=bound, dtype=jnp.float32)
    b = jax.random.uniform(k_b, (VOCAB_SIZE_W2V,),
                           minval=-bound, maxval=bound, dtype=jnp.float32)

    # Pack the Linear params once (bf16, vocab-pad, transpose, -inf bias pad).
    wt_packed, b_packed = pack_cbow_linear(w, b)

    # Small sentence: seq length 8 of token ids in [0, 1000)
    S = 8
    sentences = jax.random.randint(k_sent, (S,), 0, VOCAB_SIZE_W2V,
                                   dtype=jnp.int32)

    loss, mid_tokens, pred_word = cbow_forward(sentences, embed_table,
                                               wt_packed, b_packed)
    jax.block_until_ready((loss, mid_tokens, pred_word))

    # Pure-JAX f32 reference of the PyTorch forward (double log_softmax).
    emb_ref = jnp.tanh(embed_table[sentences])
    ctx_ref = emb_ref[:-2] + emb_ref[2:]
    logits_ref = ctx_ref @ w.T + b
    pred_ref = jax.nn.log_softmax(logits_ref, axis=1)
    ls2_ref = jax.nn.log_softmax(pred_ref, axis=1)
    tgt_ref = sentences[1:-1]
    loss_ref = -jnp.mean(ls2_ref[jnp.arange(S - 2), tgt_ref])

    assert pred_word.shape == (S - 2, VOCAB_SIZE_W2V)
    assert mid_tokens.shape == (S - 2,)
    assert loss.shape == ()
    assert bool(jnp.all(mid_tokens == sentences[1:-1]))
    # Tolerances sized for bf16 MXU inputs with f32 accumulation at D=128.
    assert bool(jnp.allclose(pred_word, pred_ref, atol=0.05)), "pred mismatch"
    assert bool(jnp.allclose(loss, loss_ref, atol=0.03)), "loss mismatch"
    print("KERNEL_OK")
</pallas_src>

<mosaic_0001>
module attributes {stable_mosaic.version = 11 : i64} {
  func.func @cbow_kernel(%arg0: i32, %arg1: memref<8x128xbf16, #tpu.memory_space<vmem>>, %arg2: memref<128x1024xbf16, #tpu.memory_space<vmem>>, %arg3: memref<1x1024xf32, #tpu.memory_space<vmem>>, %arg4: memref<8x1024xf32, #tpu.memory_space<vmem>>) attributes {dimension_semantics = [#tpu.dimension_semantics<parallel>], iteration_bounds = array<i64: 1>, scalar_prefetch = 0 : i64, scratch_operands = 0 : i64, tpu.core_type = #tpu.core_type<tc>, window_params = [{transform_indices = @transform_0, window_bounds = array<i64: 8, 128>}, {pipeline_mode = #tpu.pipeline_mode<synchronous>, transform_indices = @transform_1, window_bounds = array<i64: 128, 1024>}, {pipeline_mode = #tpu.pipeline_mode<synchronous>, transform_indices = @transform_2, window_bounds = array<i64: 1, 1024>}, {transform_indices = @transform_3, window_bounds = array<i64: 8, 1024>}]} {
    %c0 = arith.constant 0 : index
    %c0_0 = arith.constant 0 : index
    %0 = vector.load %arg1[%c0, %c0_0] : memref<8x128xbf16, #tpu.memory_space<vmem>>, vector<8x128xbf16>
    %c0_1 = arith.constant 0 : index
    %c0_2 = arith.constant 0 : index
    %1 = vector.load %arg2[%c0_1, %c0_2] : memref<128x1024xbf16, #tpu.memory_space<vmem>>, vector<128x1024xbf16>
    %cst = arith.constant dense<0.000000e+00> : vector<8x1024xf32>
    %2 = tpu.matmul %0, %1, %cst {dimension_numbers = #tpu.dot_dimension_numbers<[1], [0], [0], [1], [0, 0, 1, 1], [], []>} : vector<8x128xbf16>, vector<128x1024xbf16>, vector<8x1024xf32> -> vector<8x1024xf32>
    %c0_3 = arith.constant 0 : index
    %c0_4 = arith.constant 0 : index
    %3 = vector.load %arg3[%c0_3, %c0_4] : memref<1x1024xf32, #tpu.memory_space<vmem>>, vector<1x1024xf32>
    %4 = vector.broadcast %3 : vector<1x1024xf32> to vector<8x1024xf32>
    %5 = arith.addf %2, %4 : vector<8x1024xf32>
    %cst_5 = arith.constant dense<0xFF800000> : vector<8xf32>
    %6 = vector.multi_reduction <maximumf>, %5, %cst_5 [1] : vector<8x1024xf32> to vector<8xf32>
    %7 = vector.shape_cast %6 : vector<8xf32> to vector<8x1xf32>
    %8 = vector.broadcast %7 : vector<8x1xf32> to vector<8x1024xf32>
    %9 = arith.subf %5, %8 : vector<8x1024xf32>
    %10 = math.exp %9 : vector<8x1024xf32>
    %cst_6 = arith.constant dense<0.000000e+00> : vector<8xf32>
    %11 = vector.multi_reduction <add>, %10, %cst_6 [1] : vector<8x1024xf32> to vector<8xf32>
    %12 = vector.shape_cast %11 : vector<8xf32> to vector<8x1xf32>
    %13 = math.log %12 : vector<8x1xf32>
    %14 = vector.broadcast %13 : vector<8x1xf32> to vector<8x1024xf32>
    %15 = arith.subf %9, %14 : vector<8x1024xf32>
    %c0_7 = arith.constant 0 : index
    %c0_8 = arith.constant 0 : index
    %16 = vector.load %arg4[%c0_7, %c0_8] : memref<8x1024xf32, #tpu.memory_space<vmem>>, vector<8x1024xf32>
    tpu.vector_store %arg4[%c0_7, %c0_8], %15 {strides = array<i32>} : memref<8x1024xf32, #tpu.memory_space<vmem>>, vector<8x1024xf32>,
    return
  }
  func.func @transform_0(%arg0: i32) -> (i32, i32) {
    %c0_i32 = arith.constant 0 : i32
    %c0_i32_0 = arith.constant 0 : i32
    return %arg0, %c0_i32 : i32, i32
  }
  func.func @transform_1(%arg0: i32) -> (i32, i32) {
    %c0_i32 = arith.constant 0 : i32
    %c0_i32_0 = arith.constant 0 : i32
    %c0_i32_1 = arith.constant 0 : i32
    return %c0_i32, %c0_i32_0 : i32, i32
  }
  func.func @transform_2(%arg0: i32) -> (i32, i32) {
    %c0_i32 = arith.constant 0 : i32
    %c0_i32_0 = arith.constant 0 : i32
    %c0_i32_1 = arith.constant 0 : i32
    return %c0_i32, %c0_i32_0 : i32, i32
  }
  func.func @transform_3(%arg0: i32) -> (i32, i32) {
    %c0_i32 = arith.constant 0 : i32
    %c0_i32_0 = arith.constant 0 : i32
    return %arg0, %c0_i32 : i32, i32
  }
}

</mosaic_0001>

<bundles_post_ra>
// kernel: cbow_forward.1
= control target key start
LH: loop header
LB: loop body
LE: loop exit
PB: predicated region body
PF: predicated region fallthrough
CT: control target
= control target key end

     0   :  { %8 = vsyncpa [#allocation3], 0  ;;  %s795_s12 = smov [#allocation2]   ;;  %s871_s0 = inlined_call_operand.vmem [shape: bf16[8,128], index: 0, kind: input, shape index: {}]   ;;  %s872_s1 = inlined_call_operand.hbm [shape: bf16[128,1024], index: 1, kind: input, shape index: {}]   ;;  %s873_s2 = inlined_call_operand.vmem [shape: f32[1,1024], index: 2, kind: input, shape index: {}]   ;;  %s874_s3 = inlined_call_operand.vmem [shape: f32[8,1024], index: 3, kind: output, shape index: {}]  }
   0x1   :  { %s16_s13 = sshll.u32 %s795_s12, 4  ;;  %s771_s16 = scalar_lea.hbm %s872_s1, 8192  ;;  %s17_s13 = int_to_ptr.vmem [resolvable:$true] %s16_s13 }
   0x2   :  { %p772_p0 = scmp.ne.s32.totalorder %s872_s1, %s771_s16  ;;  %p775_p1 = scmp.lt.u32.totalorder %s771_s16, %s872_s1 }
   0x4   :  { %p777_p2 = pnand %p775_p1, %p772_p0 }
   0x6   :  { %780 = shalt.err (!%p777_p2)
}
   0x7   :  { %s781_s21 = scalar_lea.vmem %s17_s13, 8192  ;;  %p786_p4 = scmp.lt.s32.totalorder %s17_s13, %s17_s13 }
   0x8   :  { %p782_p3 = scmp.ne.s32.totalorder %s17_s13, %s781_s21  ;;  %p787_p5 = scmp.lt.s32.totalorder %s781_s21, %s781_s21 }
   0xa   :  { %p788_p6 = por %p787_p5, %p786_p4 }
   0xc   :  { %p789_p7 = pnand %p788_p6, %p782_p3 }
   0xe   :  { %792 = shalt.err (!%p789_p7)
}
   0xf   :  { %s796_s22 = smov 512   ;;  %s797_s23 = smov 32  }
  0x10   :  { %22 = dma.hbm_to_vmem [thread:$0]  %s872_s1, 8192, %s17_s13, [#allocation3], %s796_s22, %s796_s22, %s797_s23  }
  0x11   :  { %793 = dma.done.wait [#allocation3], 8192  }
  0x12   :  { %794 = vsyncadd [#allocation3], 4294959104  ;;  %v798_v0 = vmov 0   ;;  %v30_v1 = vld [vmem:[#allocation2] sm:$0xff]  ;;  %v31_v3 = vld [vmem:[#allocation2 + $0x8] sm:$0xff] }
  0x13   :  { %488 = vmatprep.mubr.bf16.mxu0 %v798_v0  ;;  %529 = vmatprep.mubr.bf16.mxu1 %v798_v0  ;;  %v34_v2 = vld [vmem:[#allocation2 + $0x20] sm:$0xff]  ;;  %v35_v5 = vld [vmem:[#allocation2 + $0x28] sm:$0xff]  ;;  %v32_v63 = vld [vmem:[#allocation2 + $0x10] sm:$0xff] }
  0x14   :  { %v686_v4 = vcombine.high %v30_v1, %v34_v2  ;;  %v685_v6 = vcombine.low %v30_v1, %v34_v2  ;;  %v38_v7 = vld [vmem:[#allocation2 + $0x40] sm:$0xff]  ;;  %v688_v9 = vcombine.high %v31_v3, %v35_v5  ;;  %v687_v10 = vcombine.low %v31_v3, %v35_v5  ;;  %v39_v12 = vld [vmem:[#allocation2 + $0x48] sm:$0xff]  ;;  %v36_v1 = vld [vmem:[#allocation2 + $0x30] sm:$0xff] }
  0x15   :  { %v42_v8 = vld [vmem:[#allocation2 + $0x60] sm:$0xff]  ;;  %v43_v13 = vld [vmem:[#allocation2 + $0x68] sm:$0xff]  ;;  %v33_v2 = vld [vmem:[#allocation2 + $0x18] sm:$0xff] }
  0x16   :  { %v694_v11 = vcombine.high %v38_v7, %v42_v8  ;;  %v46_v14 = vld [vmem:[#allocation2 + $0x80] sm:$0xff]  ;;  %456 = vmatprep.subr.bf16.mxu0 %v686_v4  ;;  %v696_v15 = vcombine.high %v39_v12, %v43_v13  ;;  %v47_v17 = vld [vmem:[#allocation2 + $0x88] sm:$0xff]  ;;  %497 = vmatprep.subr.bf16.mxu1 %v688_v9  ;;  %v693_v19 = vcombine.low %v38_v7, %v42_v8  ;;  %v37_v3 = vld [vmem:[#allocation2 + $0x38] sm:$0xff] }
  0x17   :  { %v50_v16 = vld [vmem:[#allocation2 + $0xa0] sm:$0xff]  ;;  %v51_v18 = vld [vmem:[#allocation2 + $0xa8] sm:$0xff]  ;;  %457 = vmatpush1.bf16.msra.mxu0 %v685_v6  ;;  %498 = vmatpush1.bf16.msra.mxu1 %v687_v10  ;;  %v695_v20 = vcombine.low %v39_v12, %v43_v13  ;;  %v690_v6 = vcombine.high %v32_v63, %v36_v1  ;;  %v692_v7 = vcombine.high %v33_v2, %v37_v3  ;;  %v40_v8 = vld [vmem:[#allocation2 + $0x50] sm:$0xff] }
  0x18   :  { %458 = vmatprep.subr.bf16.mxu0 %v694_v11  ;;  %v702_v21 = vcombine.high %v46_v14, %v50_v16  ;;  %499 = vmatprep.subr.bf16.mxu1 %v696_v15  ;;  %v704_v22 = vcombine.high %v47_v17, %v51_v18  ;;  %v54_v23 = vld [vmem:[#allocation2 + $0xc0] sm:$0xff]  ;;  %v55_v25 = vld [vmem:[#allocation2 + $0xc8] sm:$0xff]  ;;  %v701_v27 = vcombine.low %v46_v14, %v50_v16  ;;  %v44_v9 = vld [vmem:[#allocation2 + $0x70] sm:$0xff] }
  0x19   :  { %v58_v24 = vld [vmem:[#allocation2 + $0xe0] sm:$0xff]  ;;  %v59_v26 = vld [vmem:[#allocation2 + $0xe8] sm:$0xff]  ;;  %v703_v28 = vcombine.low %v47_v17, %v51_v18  ;;  %v41_v10 = vld [vmem:[#allocation2 + $0x58] sm:$0xff]  ;;  %v689_v13 = vcombine.low %v32_v63, %v36_v1  ;;  %v691_v14 = vcombine.low %v33_v2, %v37_v3  ;;  %v698_v15 = vcombine.high %v40_v8, %v44_v9 }
  0x1a   :  { %v710_v29 = vcombine.high %v54_v23, %v58_v24  ;;  %v712_v30 = vcombine.high %v55_v25, %v59_v26  ;;  %v62_v31 = vld [vmem:[#allocation2 + $0x100] sm:$0xff]  ;;  %v63_v33 = vld [vmem:[#allocation2 + $0x108] sm:$0xff]  ;;  %v709_v35 = vcombine.low %v54_v23, %v58_v24  ;;  %v711_v36 = vcombine.low %v55_v25, %v59_v26  ;;  %v45_v11 = vld [vmem:[#allocation2 + $0x78] sm:$0xff] }
  0x1b   :  { %459 = vmatpush1.bf16.msra.mxu0 %v693_v19  ;;  %500 = vmatpush1.bf16.msra.mxu1 %v695_v20  ;;  %v66_v32 = vld [vmem:[#allocation2 + $0x120] sm:$0xff]  ;;  %v67_v34 = vld [vmem:[#allocation2 + $0x128] sm:$0xff]  ;;  %v700_v16 = vcombine.high %v41_v10, %v45_v11  ;;  %v48_v17 = vld [vmem:[#allocation2 + $0x90] sm:$0xff] }
  0x1c   :  { %460 = vmatprep.subr.bf16.mxu0 %v702_v21  ;;  %501 = vmatprep.subr.bf16.mxu1 %v704_v22  ;;  %v718_v37 = vcombine.high %v62_v31, %v66_v32  ;;  %v720_v38 = vcombine.high %v63_v33, %v67_v34  ;;  %v70_v39 = vld [vmem:[#allocation2 + $0x140] sm:$0xff]  ;;  %v71_v41 = vld [vmem:[#allocation2 + $0x148] sm:$0xff]  ;;  %v717_v43 = vcombine.low %v62_v31, %v66_v32  ;;  %v52_v18 = vld [vmem:[#allocation2 + $0xb0] sm:$0xff] }
  0x1d   :  { %v74_v40 = vld [vmem:[#allocation2 + $0x160] sm:$0xff]  ;;  %v75_v42 = vld [vmem:[#allocation2 + $0x168] sm:$0xff]  ;;  %v719_v44 = vcombine.low %v63_v33, %v67_v34  ;;  %v49_v19 = vld [vmem:[#allocation2 + $0x98] sm:$0xff]  ;;  %v697_v21 = vcombine.low %v40_v8, %v44_v9  ;;  %v699_v22 = vcombine.low %v41_v10, %v45_v11  ;;  %v706_v23 = vcombine.high %v48_v17, %v52_v18 }
  0x1e   :  { %v726_v45 = vcombine.high %v70_v39, %v74_v40  ;;  %v728_v46 = vcombine.high %v71_v41, %v75_v42  ;;  %v78_v47 = vld [vmem:[#allocation2 + $0x180] sm:$0xff]  ;;  %v79_v49 = vld [vmem:[#allocation2 + $0x188] sm:$0xff]  ;;  %v725_v51 = vcombine.low %v70_v39, %v74_v40  ;;  %v727_v52 = vcombine.low %v71_v41, %v75_v42  ;;  %v53_v20 = vld [vmem:[#allocation2 + $0xb8] sm:$0xff] }
  0x1f   :  { %461 = vmatpush1.bf16.msra.mxu0 %v701_v27  ;;  %502 = vmatpush1.bf16.msra.mxu1 %v703_v28  ;;  %v82_v48 = vld [vmem:[#allocation2 + $0x1a0] sm:$0xff]  ;;  %v83_v50 = vld [vmem:[#allocation2 + $0x1a8] sm:$0xff]  ;;  %v708_v24 = vcombine.high %v49_v19, %v53_v20  ;;  %v56_v25 = vld [vmem:[#allocation2 + $0xd0] sm:$0xff]  ;;  %v96_v11 = vlaneseq }
  0x20   :  { %462 = vmatprep.subr.bf16.mxu0 %v710_v29  ;;  %503 = vmatprep.subr.bf16.mxu1 %v712_v30  ;;  %v734_v53 = vcombine.high %v78_v47, %v82_v48  ;;  %v736_v54 = vcombine.high %v79_v49, %v83_v50  ;;  %v86_v55 = vld [vmem:[#allocation2 + $0x1c0] sm:$0xff]  ;;  %v87_v57 = vld [vmem:[#allocation2 + $0x1c8] sm:$0xff]  ;;  %v733_v59 = vcombine.low %v78_v47, %v82_v48  ;;  %v60_v26 = vld [vmem:[#allocation2 + $0xf0] sm:$0xff] }
  0x21   :  { %v90_v56 = vld [vmem:[#allocation2 + $0x1e0] sm:$0xff]  ;;  %v91_v58 = vld [vmem:[#allocation2 + $0x1e8] sm:$0xff]  ;;  %v735_v60 = vcombine.low %v79_v49, %v83_v50  ;;  %v57_v27 = vld [vmem:[#allocation2 + $0xd8] sm:$0xff]  ;;  %v705_v29 = vcombine.low %v48_v17, %v52_v18  ;;  %v707_v30 = vcombine.low %v49_v19, %v53_v20  ;;  %v714_v31 = vcombine.high %v56_v25, %v60_v26 }
  0x22   :  { %v742_v61 = vcombine.high %v86_v55, %v90_v56  ;;  %v744_v62 = vcombine.high %v87_v57, %v91_v58  ;;  %v741_v4 = vcombine.low %v86_v55, %v90_v56  ;;  %v743_v5 = vcombine.low %v87_v57, %v91_v58  ;;  %v836_v12 = vld [vmem:[%s871_s0] sm:$0xf]  ;;  %v61_v28 = vld [vmem:[#allocation2 + $0xf8] sm:$0xff]  ;;  %v64_v33 = vld [vmem:[#allocation2 + $0x110] sm:$0xff] }
  0x23   :  { %463 = vmatpush1.bf16.msra.mxu0 %v709_v35  ;;  %504 = vmatpush1.bf16.msra.mxu1 %v711_v36  ;;  %v716_v32 = vcombine.high %v57_v27, %v61_v28  ;;  %v68_v34 = vld [vmem:[#allocation2 + $0x130] sm:$0xff]  ;;  %v65_v35 = vld [vmem:[#allocation2 + $0x118] sm:$0xff] }
  0x24   :  { %464 = vmatprep.subr.bf16.mxu0 %v718_v37  ;;  %505 = vmatprep.subr.bf16.mxu1 %v720_v38  ;;  %v69_v36 = vld [vmem:[#allocation2 + $0x138] sm:$0xff]  ;;  %v713_v37 = vcombine.low %v56_v25, %v60_v26  ;;  %v715_v38 = vcombine.low %v57_v27, %v61_v28  ;;  %v722_v39 = vcombine.high %v64_v33, %v68_v34  ;;  %v72_v40 = vld [vmem:[#allocation2 + $0x150] sm:$0xff] }
  0x25   :  { %v76_v41 = vld [vmem:[#allocation2 + $0x170] sm:$0xff]  ;;  %v73_v42 = vld [vmem:[#allocation2 + $0x158] sm:$0xff] }
  0x26   :  { %v80_v48 = vld [vmem:[#allocation2 + $0x190] sm:$0xff]  ;;  %v81_v50 = vld [vmem:[#allocation2 + $0x198] sm:$0xff] }
  0x27   :  { %465 = vmatpush1.bf16.msra.mxu0 %v717_v43  ;;  %506 = vmatpush1.bf16.msra.mxu1 %v719_v44  ;;  %v77_v43 = vld [vmem:[#allocation2 + $0x178] sm:$0xff]  ;;  %v721_v44 = vcombine.low %v64_v33, %v68_v34  ;;  %v84_v49 = vld [vmem:[#allocation2 + $0x1b0] sm:$0xff] }
  0x28   :  { %466 = vmatprep.subr.bf16.mxu0 %v726_v45  ;;  %507 = vmatprep.subr.bf16.mxu1 %v728_v46  ;;  %v723_v45 = vcombine.low %v65_v35, %v69_v36  ;;  %v730_v46 = vcombine.high %v72_v40, %v76_v41  ;;  %v732_v47 = vcombine.high %v73_v42, %v77_v43  ;;  %v88_v56 = vld [vmem:[#allocation2 + $0x1d0] sm:$0xff]  ;;  %v89_v58 = vld [vmem:[#allocation2 + $0x1d8] sm:$0xff] }
  0x29   :  { %v92_v57 = vld [vmem:[#allocation2 + $0x1f0] sm:$0xff] }
  0x2a   :  { %v745_v1 = vcombine.low %v88_v56, %v92_v57 }
  0x2b   :  { %467 = vmatpush1.bf16.msra.mxu0 %v725_v51  ;;  %508 = vmatpush1.bf16.msra.mxu1 %v727_v52  ;;  %v85_v51 = vld [vmem:[#allocation2 + $0x1b8] sm:$0xff]  ;;  %v729_v52 = vcombine.low %v72_v40, %v76_v41 }
  0x2c   :  { %468 = vmatprep.subr.bf16.mxu0 %v734_v53  ;;  %509 = vmatprep.subr.bf16.mxu1 %v736_v54  ;;  %v731_v53 = vcombine.low %v73_v42, %v77_v43  ;;  %v738_v54 = vcombine.high %v80_v48, %v84_v49  ;;  %v740_v55 = vcombine.high %v81_v50, %v85_v51 }
  0x2f   :  { %469 = vmatpush1.bf16.msra.mxu0 %v733_v59  ;;  %510 = vmatpush1.bf16.msra.mxu1 %v735_v60  ;;  %v93_v59 = vld [vmem:[#allocation2 + $0x1f8] sm:$0xff]  ;;  %v737_v60 = vcombine.low %v80_v48, %v84_v49 }
  0x30   :  { %470 = vmatprep.subr.bf16.mxu0 %v742_v61  ;;  %511 = vmatprep.subr.bf16.mxu1 %v744_v62  ;;  %v739_v61 = vcombine.low %v81_v50, %v85_v51  ;;  %v746_v62 = vcombine.high %v88_v56, %v92_v57  ;;  %v748_v63 = vcombine.high %v89_v58, %v93_v59 }
  0x31   :  { %v747_v2 = vcombine.low %v89_v58, %v93_v59 }
  0x33   :  { %471 = vmatpush1.bf16.msra.mxu0 %v741_v4  ;;  %512 = vmatpush1.bf16.msra.mxu1 %v743_v5 }
  0x34   :  { %538 = vmatprep.subr.bf16.mxu0 %v690_v6  ;;  %579 = vmatprep.subr.bf16.mxu1 %v692_v7 }
  0x36   :  { %489 = vmatmul.mubr.bf16.vlgmr.msra.gmra.mrb[0].mxu0 %v836_v12  ;;  %530 = vmatmul.mubr.bf16.vlgmr.msra.gmra.mrb[0].mxu1 %v836_v12 }
  0x37   :  { %539 = vmatpush1.bf16.msra.mxu0 %v689_v13  ;;  %580 = vmatpush1.bf16.msra.mxu1 %v691_v14  ;;  %v97_v13 = vshrl.u32 %v96_v11, 7 }
  0x38   :  { %540 = vmatprep.subr.bf16.mxu0 %v698_v15  ;;  %581 = vmatprep.subr.bf16.mxu1 %v700_v16  ;;  %v94_v16 = vld [vmem:[%s873_s2] sm:$0xff] }
  0x39   :  { %570 = vmatprep.mubr.bf16.mxu0 %v798_v0  ;;  %611 = vmatprep.mubr.bf16.mxu1 %v798_v0  ;;  %v724_v0 = vcombine.high %v65_v35, %v69_v36  ;;  %v98_v14 = vsub.s32 0, %v97_v13  ;;  %v114_v15 = vsub.s32 4, %v97_v13  ;;  %v106_v17 = vsub.s32 2, %v97_v13 }
  0x3a   :  { %v102_v18 = vsub.s32 1, %v97_v13  ;;  %v122_v19 = vsub.s32 6, %v97_v13  ;;  %v110_v20 = vsub.s32 3, %v97_v13 }
  0x3b   :  { %541 = vmatpush1.bf16.msra.mxu0 %v697_v21  ;;  %582 = vmatpush1.bf16.msra.mxu1 %v699_v22  ;;  %v126_v21 = vsub.s32 7, %v97_v13  ;;  %v99_v22 = vrot.slane %v94_v16, %v98_v14 }
  0x3c   :  { %542 = vmatprep.subr.bf16.mxu0 %v706_v23  ;;  %583 = vmatprep.subr.bf16.mxu1 %v708_v24  ;;  %v115_v23 = vrot.slane %v94_v16, %v114_v15  ;;  %v107_v24 = vrot.slane %v94_v16, %v106_v17  ;;  %v103_v25 = vrot.slane %v94_v16, %v102_v18 }
  0x3d   :  { %v123_v26 = vrot.slane %v94_v16, %v122_v19  ;;  %v111_v28 = vrot.slane %v94_v16, %v110_v20 }
  0x3f   :  { %543 = vmatpush1.bf16.msra.mxu0 %v705_v29  ;;  %584 = vmatpush1.bf16.msra.mxu1 %v707_v30  ;;  %v127_v29 = vrot.slane %v94_v16, %v126_v21 }
  0x40   :  { %544 = vmatprep.subr.bf16.mxu0 %v714_v31  ;;  %585 = vmatprep.subr.bf16.mxu1 %v716_v32 }
  0x43   :  { %545 = vmatpush1.bf16.msra.mxu0 %v713_v37  ;;  %586 = vmatpush1.bf16.msra.mxu1 %v715_v38 }
  0x44   :  { %546 = vmatprep.subr.bf16.mxu0 %v722_v39  ;;  %587 = vmatprep.subr.bf16.mxu1 %v724_v0 }
  0x47   :  { %547 = vmatpush1.bf16.msra.mxu0 %v721_v44  ;;  %588 = vmatpush1.bf16.msra.mxu1 %v723_v45 }
  0x48   :  { %548 = vmatprep.subr.bf16.mxu0 %v730_v46  ;;  %589 = vmatprep.subr.bf16.mxu1 %v732_v47 }
  0x4b   :  { %549 = vmatpush1.bf16.msra.mxu0 %v729_v52  ;;  %590 = vmatpush1.bf16.msra.mxu1 %v731_v53 }
  0x4c   :  { %550 = vmatprep.subr.bf16.mxu0 %v738_v54  ;;  %591 = vmatprep.subr.bf16.mxu1 %v740_v55 }
  0x4f   :  { %551 = vmatpush1.bf16.msra.mxu0 %v737_v60  ;;  %592 = vmatpush1.bf16.msra.mxu1 %v739_v61 }
  0x50   :  { %552 = vmatprep.subr.bf16.mxu0 %v746_v62  ;;  %593 = vmatprep.subr.bf16.mxu1 %v748_v63 }
  0x53   :  { %553 = vmatpush1.bf16.msra.mxu0 %v745_v1  ;;  %594 = vmatpush1.bf16.msra.mxu1 %v747_v2 }
  0x56   :  { %571 = vmatmul.mubr.bf16.vlgmr.msra.gmra.mrb[4].mxu0 %v836_v12  ;;  %612 = vmatmul.mubr.bf16.vlgmr.msra.gmra.mrb[4].mxu1 %v836_v12  ;;  %v118_v12 = vsub.s32 5, %v97_v13 }
  0x58   :  { %v119_v27 = vrot.slane %v94_v16, %v118_v12 }
 0x109   :  { %v490_v3 = vpop.f32.mrb[0].mxu0  ;;  %v531_v4 = vpop.f32.mrb[0].mxu1 }
 0x10a   :  { %v492_v5 = vpop.f32.mrb[1].mxu0  ;;  %v533_v6 = vpop.f32.mrb[1].mxu1  ;;  %v491_v31 = vadd.f32 %v490_v3, %v99_v22  ;;  %v532_v35 = vadd.f32 %v531_v4, %v107_v24 }
 0x10b   :  { %v494_v7 = vpop.f32.mrb[2].mxu0  ;;  %v535_v8 = vpop.f32.mrb[2].mxu1  ;;  %v493_v36 = vadd.f32 %v492_v5, %v103_v25  ;;  %v534_v40 = vadd.f32 %v533_v6, %v111_v28 }
 0x10c   :  { %v495_v9 = vpop.f32.mrb[3].mxu0  ;;  %v536_v10 = vpop.f32.mrb[3].mxu1 }
 0x129   :  { %v572_v30 = vpop.f32.mrb[4].mxu0  ;;  %v613_v33 = vpop.f32.mrb[4].mxu1 }
 0x12a   :  { %v573_v32 = vadd.f32 %v572_v30, %v115_v23  ;;  %v574_v34 = vpop.f32.mrb[5].mxu0  ;;  %v614_v37 = vadd.f32 %v613_v33, %v123_v26  ;;  %v615_v39 = vpop.f32.mrb[5].mxu1 }
 0x12b   :  { %v575_v38 = vadd.f32 %v574_v34, %v119_v27  ;;  %v576_v0 = vpop.f32.mrb[6].mxu0  ;;  %v616_v42 = vadd.f32 %v615_v39, %v127_v29  ;;  %v617_v43 = vpop.f32.mrb[6].mxu1 }
 0x12c   :  { %v620_v41 = vmax.f32 %v491_v31, %v573_v32  ;;  %v577_v44 = vpop.f32.mrb[7].mxu0  ;;  %v622_v45 = vmax.f32 %v532_v35, %v614_v37  ;;  %v618_v47 = vpop.f32.mrb[7].mxu1 }
 0x12d   :  { %v621_v46 = vmax.f32 %v493_v36, %v575_v38  ;;  %v623_v48 = vmax.f32 %v534_v40, %v616_v42 }
 0x12f   :  { %v624_v49 = vmax.f32 %v620_v41, %v621_v46  ;;  %v625_v50 = vmax.f32 %v622_v45, %v623_v48 }
 0x131   :  { %v626_v51 = vmax.f32 %v624_v49, %v625_v50 }
 0x133   :  { %627 = vmax.xlane.f32.xlu0 %v626_v51 }
 0x1c0   :  { %v628_v52 = vpop.xlane.xlu0 %627 }
 0x1c1   :  { %v629_v53 = vsub.f32 %v491_v31, %v628_v52  ;;  %v630_v54 = vsub.f32 %v493_v36, %v628_v52  ;;  %v631_v55 = vsub.f32 %v532_v35, %v628_v52  ;;  %v632_v56 = vsub.f32 %v534_v40, %v628_v52 }
 0x1c2   :  { %v633_v59 = vsub.f32 %v573_v32, %v628_v52  ;;  %v634_v61 = vsub.f32 %v575_v38, %v628_v52  ;;  %v635_v63 = vsub.f32 %v614_v37, %v628_v52  ;;  %v636_v2 = vsub.f32 %v616_v42, %v628_v52 }
 0x1c3   :  { %v637_v57 = vmul.f32 1.442695, %v629_v53  ;;  %v639_v58 = vmul.f32 1.442695, %v630_v54  ;;  %v641_v60 = vmul.f32 1.442695, %v631_v55 }
 0x1c4   :  { %v643_v62 = vmul.f32 1.442695, %v632_v56  ;;  %v645_v1 = vmul.f32 1.442695, %v633_v59  ;;  %v647_v3 = vmul.f32 1.442695, %v634_v61 }
 0x1c5   :  { %753 = vpow2.f32 %v637_v57  ;;  %v649_v4 = vmul.f32 1.442695, %v635_v63  ;;  %v651_v5 = vmul.f32 1.442695, %v636_v2 }
 0x1c6   :  { %755 = vpow2.f32 %v639_v58 }
 0x1c7   :  { %757 = vpow2.f32 %v641_v60 }
 0x1c8   :  { %759 = vpow2.f32 %v643_v62 }
 0x1c9   :  { %761 = vpow2.f32 %v645_v1 }
 0x1ca   :  { %763 = vpow2.f32 %v647_v3 }
 0x1cb   :  { %765 = vpow2.f32 %v649_v4 }
 0x1cc   :  { %767 = vpow2.f32 %v651_v5 }
 0x1cf   :  { %v754_v6 = vpop.eup %753 }
 0x1d0   :  { %v756_v7 = vpop.eup %755 }
 0x1d1   :  { %v653_v8 = vadd.f32 %v756_v7, %v754_v6  ;;  %v758_v9 = vpop.eup %757 }
 0x1d2   :  { %v760_v11 = vpop.eup %759 }
 0x1d3   :  { %v654_v10 = vadd.f32 %v758_v9, %v653_v8  ;;  %v762_v14 = vpop.eup %761 }
 0x1d4   :  { %v764_v16 = vpop.eup %763 }
 0x1d5   :  { %v655_v13 = vadd.f32 %v760_v11, %v654_v10  ;;  %v766_v18 = vpop.eup %765 }
 0x1d6   :  { %v768_v12 = vpop.eup %767 }
 0x1d7   :  { %v656_v15 = vadd.f32 %v762_v14, %v655_v13 }
 0x1d9   :  { %v657_v17 = vadd.f32 %v764_v16, %v656_v15 }
 0x1db   :  { %v658_v19 = vadd.f32 %v766_v18, %v657_v17 }
 0x1dd   :  { %v659_v20 = vadd.f32 %v768_v12, %v658_v19 }
 0x1df   :  { %660 = vadd.xlane.f32.xlu0 %v659_v20 }
 0x26c   :  { %v661_v21 = vpop.xlane.xlu0 %660 }
 0x26d   :  { %769 = vlog2.f32 %v661_v21 }
 0x277   :  { %v770_v22 = vpop.eup %769 }
 0x278   :  { %v663_v23 = vmul.f32 0.6931472, %v770_v22 }
 0x27a   :  { %v664_v24 = vsub.f32 %v629_v53, %v663_v23  ;;  %v665_v25 = vsub.f32 %v630_v54, %v663_v23  ;;  %v666_v26 = vsub.f32 %v631_v55, %v663_v23  ;;  %v667_v27 = vsub.f32 %v632_v56, %v663_v23 }
 0x27b   :  { %v668_v28 = vsub.f32 %v633_v59, %v663_v23  ;;  %v669_v29 = vsub.f32 %v634_v61, %v663_v23  ;;  %v670_v30 = vsub.f32 %v635_v63, %v663_v23  ;;  %v671_v31 = vsub.f32 %v636_v2, %v663_v23 }
 0x27c   :  { %672 = vst [vmem:[%s874_s3] sm:$0xff] %v664_v24  ;;  %673 = vst [vmem:[%s874_s3 + $0x8] sm:$0xff] %v665_v25 }
 0x27d   :  { %674 = vst [vmem:[%s874_s3 + $0x10] sm:$0xff] %v666_v26  ;;  %675 = vst [vmem:[%s874_s3 + $0x18] sm:$0xff] %v667_v27 }
 0x27e   :  { %676 = vst [vmem:[%s874_s3 + $0x20] sm:$0xff] %v668_v28  ;;  %677 = vst [vmem:[%s874_s3 + $0x28] sm:$0xff] %v669_v29 }
 0x27f   :  { %678 = vst [vmem:[%s874_s3 + $0x30] sm:$0xff] %v670_v30  ;;  %679 = vst [vmem:[%s874_s3 + $0x38] sm:$0xff] %v671_v31 }
 0x280   :  { %684 = vsyncpa [#allocation3], 1 }

</bundles_post_ra>
